<compile_context>
chip_gen: v6e
topology: v6e:2x2x1
jax: 0.10.0
libtpu: 0.0.40
codegen_flags: <defaults>
</compile_context>

<pallas_src>
import functools

import jax
import jax.numpy as jnp
from jax import lax
from jax.experimental import pallas as pl
from jax.experimental.pallas import tpu as pltpu


def _pixelnorm_kernel(x_ref, o_ref, *, eps, inv_c):
    # x_ref: (nb, C, hw_tile) tile in VMEM; reduce over channel axis (sublanes).
    x = x_ref[...]
    xf = x if x.dtype == jnp.float32 else x.astype(jnp.float32)   # widen once
    mean_sq = jnp.sum(xf * xf, axis=1, keepdims=True) * inv_c     # (nb, 1, hw), f32
    inv = lax.rsqrt(mean_sq + eps)                                # EUP rsqrt
    o_ref[...] = (xf * inv).astype(o_ref.dtype)                   # reuse xf


def _device_tuning():
    """Per-generation (target_block_bytes, vmem_cap_bytes, multi_tensorcore)."""
    try:
        kind = jax.devices()[0].device_kind.lower()
    except Exception:  # pragma: no cover - defensive fallback
        kind = ""
    if "v7" in kind:
        # 64 MiB physical VMEM: 4 x 6 MiB + headroom stays well under it.
        return 6 << 20, 56 << 20, True
    if "v6" in kind:
        # 128 MiB physical VMEM, ~1.4 TB/s HBM: 8 MiB blocks hit the roofline plateau.
        return 8 << 20, 100 << 20, False
    if "v5" in kind:
        # ~820 GB/s HBM: 2 MiB blocks are already near-optimal.
        return 2 << 20, 64 << 20, False
    # Unknown generation: conservative.
    return 4 << 20, 48 << 20, False


def pixel_norm(x, epsilon=1e-8, target_block_bytes=None):
    """x: (N, C, H, W) array. Returns same shape/dtype, PixelNorm over C."""
    n, c, h, w = x.shape
    hw = h * w
    # Free view: collapse contiguous H, W dims. No transpose, no extra HBM pass.
    x3d = x.reshape(n, c, hw)

    itemsize = jnp.dtype(x.dtype).itemsize
    auto_target, vmem_cap, multi_core = _device_tuning()
    if target_block_bytes is None:
        target_block_bytes = auto_target

    slab_bytes = c * hw * itemsize  # one batch element's (C, H*W) plane

    if slab_bytes <= target_block_bytes:
        # ---- Batch-folding path (small spatial maps, the dominant StyleGAN case).
        nb = max(1, min(n, target_block_bytes // slab_bytes))
        if multi_core and n >= 2:
            # Keep >=2 roughly even grid steps so both v7x TensorCores get work.
            nb = min(nb, -(-n // 2))
        block = (nb, c, hw)
        grid = (pl.cdiv(n, nb),)
        index_map = lambda b: (b, 0, 0)
        semantics = ("parallel",)
    else:
        # ---- Spatial-tiling path (large feature maps).
        max_lanes = max(1, target_block_bytes // (c * itemsize))
        hw_tile = (max_lanes // 128) * 128
        if hw_tile == 0:
            hw_tile = 128            # very-large-C edge case: minimum lane-dense tile
        if hw_tile >= hw:
            hw_tile = hw             # full-extent block (always legal)
        block = (1, c, hw_tile)
        hw_blocks = pl.cdiv(hw, hw_tile)
        # Longest grid axis first helps megacore sharding on v7x; harmless elsewhere.
        if hw_blocks >= n:
            grid = (hw_blocks, n)
            index_map = lambda s, b: (b, 0, s)
        else:
            grid = (n, hw_blocks)
            index_map = lambda b, s: (b, 0, s)
        semantics = ("parallel", "parallel")

    # Derive the VMEM limit from the *actual* block bytes so the tiling contract
    # is self-consistent (in + out, double-buffered, plus headroom), capped per
    # generation so we never request more than the chip can give.
    block_bytes = itemsize
    for d in block:
        block_bytes *= d
    vmem_limit = int(min(max(4 * block_bytes + (2 << 20), 32 << 20), vmem_cap))

    out3d = pl.pallas_call(
        functools.partial(_pixelnorm_kernel, eps=float(epsilon), inv_c=1.0 / c),
        out_shape=jax.ShapeDtypeStruct((n, c, hw), x.dtype),
        grid_spec=pltpu.PrefetchScalarGridSpec(
            num_scalar_prefetch=0,
            grid=grid,
            in_specs=[pl.BlockSpec(block, index_map)],
            out_specs=pl.BlockSpec(block, index_map),
        ),
        compiler_params=pltpu.CompilerParams(
            dimension_semantics=semantics,
            vmem_limit_bytes=vmem_limit,
        ),
    )(x3d)

    return out3d.reshape(n, c, h, w)


def _reference(x, eps):
    return x / jnp.sqrt(jnp.mean(x.astype(jnp.float32) ** 2, axis=1, keepdims=True) + eps)


if __name__ == "__main__":
    key = jax.random.PRNGKey(0)
    k1, k2 = jax.random.split(key)

    # Primary test: small StyleGAN-like map -> batch-folding path.
    x = jax.random.normal(k1, (2, 4, 16, 16), dtype=jnp.float32)
    y = jax.block_until_ready(pixel_norm(x, epsilon=1e-8))
    ref = _reference(x, 1e-8)
    assert y.shape == x.shape and y.dtype == x.dtype
    assert jnp.allclose(y, ref, atol=1e-5, rtol=1e-5)

    # Secondary test: force the spatial-tiling path (tiny block budget) with a
    # ragged last spatial block (hw=576, tile=512).
    x2 = jax.random.normal(k2, (1, 8, 24, 24), dtype=jnp.float32)
    y2 = jax.block_until_ready(pixel_norm(x2, epsilon=1e-8, target_block_bytes=16 << 10))
    ref2 = _reference(x2, 1e-8)
    assert y2.shape == x2.shape and y2.dtype == x2.dtype
    assert jnp.allclose(y2, ref2, atol=1e-5, rtol=1e-5)

    print("KERNEL_OK")
</pallas_src>

<mosaic_0001>
module attributes {stable_mosaic.version = 11 : i64} {
  func.func @_pixelnorm_kernel(%arg0: i32, %arg1: memref<2x4x256xf32, #tpu.memory_space<vmem>>, %arg2: memref<2x4x256xf32, #tpu.memory_space<vmem>>) attributes {dimension_semantics = [#tpu.dimension_semantics<parallel>], iteration_bounds = array<i64: 1>, scalar_prefetch = 0 : i64, scratch_operands = 0 : i64, tpu.core_type = #tpu.core_type<tc>, window_params = [{transform_indices = @transform_0, window_bounds = array<i64: 2, 4, 256>}, {transform_indices = @transform_1, window_bounds = array<i64: 2, 4, 256>}]} {
    %c0 = arith.constant 0 : index
    %c0_0 = arith.constant 0 : index
    %c0_1 = arith.constant 0 : index
    %0 = vector.load %arg1[%c0, %c0_0, %c0_1] : memref<2x4x256xf32, #tpu.memory_space<vmem>>, vector<2x4x256xf32>
    %1 = arith.mulf %0, %0 : vector<2x4x256xf32>
    %cst = arith.constant dense<0.000000e+00> : vector<2x256xf32>
    %2 = vector.multi_reduction <add>, %1, %cst [1] : vector<2x4x256xf32> to vector<2x256xf32>
    %3 = vector.shape_cast %2 : vector<2x256xf32> to vector<2x1x256xf32>
    %cst_2 = arith.constant 2.500000e-01 : f32
    %4 = vector.broadcast %cst_2 : f32 to vector<2x1x256xf32>
    %5 = arith.mulf %3, %4 : vector<2x1x256xf32>
    %cst_3 = arith.constant 9.99999993E-9 : f32
    %6 = vector.broadcast %cst_3 : f32 to vector<2x1x256xf32>
    %7 = arith.addf %5, %6 : vector<2x1x256xf32>
    %8 = math.rsqrt %7 : vector<2x1x256xf32>
    %9 = vector.broadcast %8 : vector<2x1x256xf32> to vector<2x4x256xf32>
    %10 = arith.mulf %0, %9 : vector<2x4x256xf32>
    %c0_4 = arith.constant 0 : index
    %c0_5 = arith.constant 0 : index
    %c0_6 = arith.constant 0 : index
    %11 = vector.load %arg2[%c0_4, %c0_5, %c0_6] : memref<2x4x256xf32, #tpu.memory_space<vmem>>, vector<2x4x256xf32>
    tpu.vector_store %arg2[%c0_4, %c0_5, %c0_6], %10 {strides = array<i32>} : memref<2x4x256xf32, #tpu.memory_space<vmem>>, vector<2x4x256xf32>,
    return
  }
  func.func @transform_0(%arg0: i32) -> (i32, i32, i32) {
    %c0_i32 = arith.constant 0 : i32
    %c0_i32_0 = arith.constant 0 : i32
    %c0_i32_1 = arith.constant 0 : i32
    return %arg0, %c0_i32, %c0_i32_0 : i32, i32, i32
  }
  func.func @transform_1(%arg0: i32) -> (i32, i32, i32) {
    %c0_i32 = arith.constant 0 : i32
    %c0_i32_0 = arith.constant 0 : i32
    %c0_i32_1 = arith.constant 0 : i32
    return %arg0, %c0_i32, %c0_i32_0 : i32, i32, i32
  }
}

</mosaic_0001>

<bundles_post_ra>
// kernel: tpu_custom_call.1
= control target key start
LH: loop header
LB: loop body
LE: loop exit
PB: predicated region body
PF: predicated region fallthrough
CT: control target
= control target key end

     0   :  { %6 = vsyncpa [#allocation3], 0  ;;  %s185_s0 = inlined_call_operand.hbm [shape: f32[2,4,256], index: 0, kind: input, shape index: {}]   ;;  %s186_s1 = inlined_call_operand.hbm [shape: f32[2,4,256], index: 1, kind: output, shape index: {}]  }
   0x1   :  { %7 = vsyncpa [#allocation4], 0  ;;  %s159_s6 = smov [#allocation2]  }
   0x2   :  { %s13_s7 = sshll.u32 %s159_s6, 4  ;;  %s14_s7 = int_to_ptr.vmem [resolvable:$true] %s13_s7 }
   0x3   :  { %s123_s8 = scalar_lea.vmem %s14_s7, 256  ;;  %p128_p1 = scmp.lt.s32.totalorder %s14_s7, %s14_s7 }
   0x4   :  { %p124_p0 = scmp.ne.s32.totalorder %s14_s7, %s123_s8  ;;  %p129_p2 = scmp.lt.s32.totalorder %s123_s8, %s123_s8 }
   0x6   :  { %p130_p3 = por %p129_p2, %p128_p1 }
   0x8   :  { %p131_p4 = pnand %p130_p3, %p124_p0 }
   0xa   :  { %134 = shalt.err (!%p131_p4)
}
   0xb   :  { %s160_s9 = smov 128   ;;  %s161_s10 = smov 8  }
   0xc   :  { %19 = dma.hbm_to_vmem [thread:$0]  %s185_s0, 256, %s14_s7, [#allocation3], %s160_s9, %s160_s9, %s161_s10  }
   0xd   :  { %155 = dma.done.wait [#allocation3], 256  }
   0xe   :  { %156 = vsyncadd [#allocation3], 4294967040  ;;  %v23_v0 = vld [vmem:[#allocation2] sm:$0xff]  ;;  %vm33_vm0 = vcmask 1043456   ;;  %v24_v1 = vld [vmem:[#allocation2 + $0x8] sm:$0xff]  ;;  %s162_s0 = smov [#allocation5]  }
   0xf   :  { %v25_v2 = vmul.f32 %v23_v0, %v23_v0  ;;  %v26_v3 = vmul.f32 %v24_v1, %v24_v1  ;;  %s91_s13 = sshll.u32 %s162_s0, 4  ;;  %s92_s13 = int_to_ptr.vmem [resolvable:$true] %s91_s13 }
  0x10   :  { %s135_s14 = scalar_lea.vmem %s92_s13, 256  ;;  %p140_p6 = scmp.lt.s32.totalorder %s92_s13, %s92_s13 }
  0x11   :  { %v29_v4 = vcombine.high %v25_v2, %v25_v2  ;;  %v34_v5 = vsel %vm33_vm0, %v25_v2, 0.0  ;;  %v30_v6 = vcombine.high %v26_v3, %v26_v3  ;;  %v48_v7 = vsel %vm33_vm0, %v26_v3, 0.0  ;;  %p136_p5 = scmp.ne.s32.totalorder %s92_s13, %s135_s14  ;;  %p141_p7 = scmp.lt.s32.totalorder %s135_s14, %s135_s14 }
  0x12   :  { %v35_v8 = vrot.slane %v34_v5, 4  ;;  %v49_v9 = vrot.slane %v48_v7, 4 }
  0x13   :  { %v41_v10 = vsel %vm33_vm0, %v29_v4, 0.0  ;;  %v55_v11 = vsel %vm33_vm0, %v30_v6, 0.0  ;;  %p142_p8 = por %p141_p7, %p140_p6 }
  0x14   :  { %v36_v12 = vadd.f32 %v35_v8, %v34_v5  ;;  %v42_v13 = vrot.slane %v41_v10, 4  ;;  %v50_v14 = vadd.f32 %v49_v9, %v48_v7  ;;  %v56_v15 = vrot.slane %v55_v11, 4 }
  0x15   :  { %p143_p9 = pnand %p142_p8, %p136_p5 }
  0x16   :  { %v37_v16 = vrot.slane %v36_v12, 2  ;;  %v43_v17 = vadd.f32 %v42_v13, %v41_v10  ;;  %v51_v18 = vrot.slane %v50_v14, 2  ;;  %v57_v19 = vadd.f32 %v56_v15, %v55_v11 }
  0x18   :  { %v38_v20 = vadd.f32 %v37_v16, %v36_v12  ;;  %v44_v21 = vrot.slane %v43_v17, 2  ;;  %v52_v22 = vadd.f32 %v51_v18, %v50_v14  ;;  %v58_v23 = vrot.slane %v57_v19, 2 }
  0x1a   :  { %v39_v24 = vrot.slane %v38_v20, 1  ;;  %v45_v25 = vadd.f32 %v44_v21, %v43_v17  ;;  %v53_v26 = vrot.slane %v52_v22, 1  ;;  %v59_v27 = vadd.f32 %v58_v23, %v57_v19 }
  0x1c   :  { %v40_v28 = vadd.f32 %v39_v24, %v38_v20  ;;  %v46_v29 = vrot.slane %v45_v25, 1  ;;  %v54_v30 = vadd.f32 %v53_v26, %v52_v22  ;;  %v60_v31 = vrot.slane %v59_v27, 1 }
  0x1e   :  { %v47_v32 = vadd.f32 %v46_v29, %v45_v25  ;;  %v62_v33 = vmul.f32 0.25, %v40_v28  ;;  %v61_v34 = vadd.f32 %v60_v31, %v59_v27  ;;  %v64_v35 = vmul.f32 0.25, %v54_v30 }
  0x20   :  { %v63_v36 = vmul.f32 0.25, %v47_v32  ;;  %v66_v37 = vadd.f32 1e-08, %v62_v33  ;;  %v65_v38 = vmul.f32 0.25, %v61_v34  ;;  %v68_v39 = vadd.f32 1e-08, %v64_v35 }
  0x22   :  { %v67_v40 = vadd.f32 1e-08, %v63_v36  ;;  %107 = vrsqrt.f32 %v66_v37  ;;  %v69_v41 = vadd.f32 1e-08, %v65_v38 }
  0x23   :  { %109 = vrsqrt.f32 %v68_v39 }
  0x24   :  { %111 = vrsqrt.f32 %v67_v40 }
  0x25   :  { %113 = vrsqrt.f32 %v69_v41 }
  0x2f   :  { %v108_v42 = vpop.eup %107 }
  0x30   :  { %v110_v43 = vpop.eup %109 }
  0x31   :  { %v112_v44 = vpop.eup %111 }
  0x32   :  { %v114_v45 = vpop.eup %113  ;;  %v78_v46 = vcombine.low %v108_v42, %v112_v44 }
  0x33   :  { %v79_v47 = vcombine.low %v110_v43, %v114_v45 }
  0x34   :  { %v82_v48 = vmul.f32 %v78_v46, %v23_v0 }
  0x35   :  { %v83_v49 = vmul.f32 %v79_v47, %v24_v1 }
  0x36   :  { %84 = vst [vmem:[#allocation5] sm:$0xff] %v82_v48 }
  0x37   :  { %85 = vst [vmem:[#allocation5 + $0x8] sm:$0xff] %v83_v49 }
  0x38   :  { %146 = shalt.err (!%p143_p9)
}
  0x39   :  { %97 = dma.vmem_to_hbm [thread:$0]  %s92_s13, 256, %s186_s1, [#allocation4], %s160_s9, %s160_s9, %s161_s10  }
  0x3a   :  { %157 = dma.done.wait [#allocation4], 256  }
  0x3b   :  { %158 = vsyncadd [#allocation4], 4294967040 }
  0x3c   :  { %101 = vsyncpa [#allocation3], 1 }
  0x3d   :  { %102 = vsyncpa [#allocation4], 1 }

</bundles_post_ra>
